<compile_context>
chip_gen: v6e
topology: v6e:2x2x1
jax: 0.10.0
libtpu: 0.0.40
codegen_flags: <defaults>
</compile_context>

<pallas_src>
import jax
import jax.numpy as jnp
from jax import lax
from jax.experimental import pallas as pl
from jax.experimental.pallas import tpu as pltpu

EPS = 1e-12  # F.normalize default eps


def _round_up(x, m):
    return ((x + m - 1) // m) * m


def sngp_head_kernel(h_ref, w_ref, m_ref):
    # h_ref: (TB, D) activations block; w_ref: (1, D) spectrally-normalized weight.
    # Contract over D -> (1, TB): lane-dense result, unmasked stores when TB % 128 == 0.
    m_ref[...] = lax.dot_general(
        w_ref[...], h_ref[...],
        dimension_numbers=(((1,), (1,)), ((), ())),
        preferred_element_type=jnp.float32)


def sngp_head(h, w, u, rho, *, tb=512):
    """h: (B, D) f32, w: (1, D) f32 Linear weight, u: (1,) f32, rho: scalar f32.

    Returns (m, v), each of shape (B,), matching SNGPHead.forward.
    """
    B, D = h.shape
    h = jnp.asarray(h, jnp.float32)
    w = jnp.asarray(w, jnp.float32).reshape(1, D)
    u = jnp.asarray(u, jnp.float32).reshape(1)
    rho = jnp.asarray(rho, jnp.float32)

    # --- hoisted SpectralDense normalization (loop-invariant, tiny (1,D) op) ---
    # v     = F.normalize(W^T @ u, dim=0)
    # u_new = F.normalize(W @ v, dim=0)
    # sigma = u_new @ (W @ v)  ;  w_sn = W / sigma
    v_vec = (w.T @ u)                                   # (D,)
    v_vec = v_vec / jnp.maximum(jnp.linalg.norm(v_vec), EPS)
    wv = w @ v_vec                                      # (1,)
    u_new = wv / jnp.maximum(jnp.linalg.norm(wv), EPS)  # (1,)
    sigma = u_new @ wv                                  # scalar
    w_sn = w / sigma                                    # (1, D)

    # --- batch tile sizing (VMEM-aware: keep 2x double-buffered h block <~16 MiB) ---
    vmem_budget_bytes = 16 * 1024 * 1024
    tb_cap = max(8, (vmem_budget_bytes // (2 * D * 4)) // 8 * 8)
    tb_eff = min(tb, tb_cap, _round_up(B, 8))
    tb_eff = max(8, (tb_eff // 8) * 8)

    B_pad = _round_up(B, tb_eff)
    if B_pad != B:
        h = jnp.pad(h, ((0, B_pad - B), (0, 0)))
    grid = (B_pad // tb_eff,)

    m2d = pl.pallas_call(
        sngp_head_kernel,
        out_shape=jax.ShapeDtypeStruct((grid[0], tb_eff), jnp.float32),
        grid_spec=pltpu.PrefetchScalarGridSpec(
            num_scalar_prefetch=0,
            grid=grid,
            in_specs=[
                pl.BlockSpec((tb_eff, D), lambda i: (i, 0)),  # h: tiled over batch
                pl.BlockSpec((1, D), lambda i: (0, 0)),       # w_sn: replicated
            ],
            out_specs=pl.BlockSpec((1, tb_eff), lambda i: (i, 0)),  # m: lane-dense
        ),
        compiler_params=pltpu.CompilerParams(
            dimension_semantics=("parallel",)),
    )(h, w_sn)

    m = m2d.reshape(-1)[:B]
    v = jnp.broadcast_to(rho, m.shape)  # rho.expand_as(m), produced outside the kernel
    return m, v


def ref_forward(h, w, u, rho):
    """Pure-JAX reference mirroring the PyTorch math exactly."""
    v = w.T @ u                                        # (D,)
    v = v / jnp.maximum(jnp.linalg.norm(v), EPS)
    u_new = w @ v                                      # (1,)
    u_new = u_new / jnp.maximum(jnp.linalg.norm(u_new), EPS)
    sigma = u_new @ (w @ v)                            # scalar
    w_sn = w / sigma
    m = (h @ w_sn.T)[:, 0]
    return m, jnp.full_like(m, rho)


if __name__ == "__main__":
    in_dim = 32
    batch = 16

    key = jax.random.PRNGKey(0)
    k_h, k_w, k_u_dense, k_u_head = jax.random.split(key, 4)

    h = jax.random.normal(k_h, (batch, in_dim), jnp.float32)
    # nn.Linear(in_dim, 1, bias=False).weight -> shape (1, in_dim)
    w = jax.random.normal(k_w, (1, in_dim), jnp.float32) / jnp.sqrt(in_dim)
    # SpectralDense power-iteration vector (out_dim = 1)
    u_dense = jax.random.normal(k_u_dense, (1,), jnp.float32)
    # Head-level u (shape (in_dim,)) from the module __init__ — unused (see note).
    u_head = jax.random.normal(k_u_head, (in_dim,), jnp.float32)  # noqa: F841
    rho = jnp.float32(1.0)

    m, v = sngp_head(h, w, u_dense, rho)
    jax.block_until_ready((m, v))

    m_ref, v_ref = ref_forward(h, w, u_dense, rho)
    assert m.shape == (batch,) and v.shape == (batch,)
    assert jnp.allclose(m, m_ref, atol=1e-5, rtol=1e-5)
    assert jnp.allclose(v, v_ref, atol=1e-6, rtol=1e-6)

    print("KERNEL_OK")
</pallas_src>

<mosaic_0001>
module attributes {stable_mosaic.version = 11 : i64} {
  func.func @sngp_head_kernel(%arg0: i32, %arg1: memref<16x32xf32, #tpu.memory_space<vmem>>, %arg2: memref<1x32xf32, #tpu.memory_space<vmem>>, %arg3: memref<1x16xf32, #tpu.memory_space<vmem>>) attributes {dimension_semantics = [#tpu.dimension_semantics<parallel>], iteration_bounds = array<i64: 1>, scalar_prefetch = 0 : i64, scratch_operands = 0 : i64, tpu.core_type = #tpu.core_type<tc>, window_params = [{transform_indices = @transform_0, window_bounds = array<i64: 16, 32>}, {pipeline_mode = #tpu.pipeline_mode<synchronous>, transform_indices = @transform_1, window_bounds = array<i64: 1, 32>}, {transform_indices = @transform_2, window_bounds = array<i64: 1, 16>}]} {
    %c0 = arith.constant 0 : index
    %c0_0 = arith.constant 0 : index
    %0 = vector.load %arg2[%c0, %c0_0] : memref<1x32xf32, #tpu.memory_space<vmem>>, vector<1x32xf32>
    %c0_1 = arith.constant 0 : index
    %c0_2 = arith.constant 0 : index
    %1 = vector.load %arg1[%c0_1, %c0_2] : memref<16x32xf32, #tpu.memory_space<vmem>>, vector<16x32xf32>
    %cst = arith.constant dense<0.000000e+00> : vector<1x16xf32>
    %2 = tpu.matmul %0, %1, %cst {dimension_numbers = #tpu.dot_dimension_numbers<[1], [1], [0], [0], [0, 0, 1, 0], [], []>} : vector<1x32xf32>, vector<16x32xf32>, vector<1x16xf32> -> vector<1x16xf32>
    %c0_3 = arith.constant 0 : index
    %c0_4 = arith.constant 0 : index
    %3 = vector.load %arg3[%c0_3, %c0_4] : memref<1x16xf32, #tpu.memory_space<vmem>>, vector<1x16xf32>
    tpu.vector_store %arg3[%c0_3, %c0_4], %2 {strides = array<i32>} : memref<1x16xf32, #tpu.memory_space<vmem>>, vector<1x16xf32>,
    return
  }
  func.func @transform_0(%arg0: i32) -> (i32, i32) {
    %c0_i32 = arith.constant 0 : i32
    %c0_i32_0 = arith.constant 0 : i32
    return %arg0, %c0_i32 : i32, i32
  }
  func.func @transform_1(%arg0: i32) -> (i32, i32) {
    %c0_i32 = arith.constant 0 : i32
    %c0_i32_0 = arith.constant 0 : i32
    %c0_i32_1 = arith.constant 0 : i32
    return %c0_i32, %c0_i32_0 : i32, i32
  }
  func.func @transform_2(%arg0: i32) -> (i32, i32) {
    %c0_i32 = arith.constant 0 : i32
    %c0_i32_0 = arith.constant 0 : i32
    return %arg0, %c0_i32 : i32, i32
  }
}

</mosaic_0001>

<bundles_post_ra>
// kernel: tpu_custom_call.1
= control target key start
LH: loop header
LB: loop body
LE: loop exit
PB: predicated region body
PF: predicated region fallthrough
CT: control target
= control target key end

     0   :  { %7 = vsyncpa [#allocation3], 0  ;;  %s219_s0 = inlined_call_operand.hbm [shape: f32[16,32], index: 0, kind: input, shape index: {}]   ;;  %s220_s1 = inlined_call_operand.vmem [shape: f32[1,32], index: 1, kind: input, shape index: {}]   ;;  %s221_s2 = inlined_call_operand.hbm [shape: f32[1,16], index: 2, kind: output, shape index: {}]  }
   0x1   :  { %8 = vsyncpa [#allocation4], 0  ;;  %s189_s9 = smov [#allocation2]  }
   0x2   :  { %s14_s10 = sshll.u32 %s189_s9, 4  ;;  %s15_s10 = int_to_ptr.vmem [resolvable:$true] %s14_s10 }
   0x3   :  { %s153_s11 = scalar_lea.vmem %s15_s10, 256  ;;  %p158_p1 = scmp.lt.s32.totalorder %s15_s10, %s15_s10 }
   0x4   :  { %p154_p0 = scmp.ne.s32.totalorder %s15_s10, %s153_s11  ;;  %p159_p2 = scmp.lt.s32.totalorder %s153_s11, %s153_s11 }
   0x6   :  { %p160_p3 = por %p159_p2, %p158_p1 }
   0x8   :  { %p161_p4 = pnand %p160_p3, %p154_p0 }
   0xa   :  { %164 = shalt.err (!%p161_p4)
}
   0xb   :  { %s190_s12 = smov 128   ;;  %s191_s13 = smov 8  }
   0xc   :  { %20 = dma.hbm_to_vmem [thread:$0]  %s219_s0, 256, %s15_s10, [#allocation3], %s190_s12, %s190_s12, %s191_s13  }
   0xd   :  { %185 = dma.done.wait [#allocation3], 256  }
   0xe   :  { %186 = vsyncadd [#allocation3], 4294967040  ;;  %v192_v0 = vmov 0.0   ;;  %vm193_vm0 = vmmov 0   ;;  %vm29_vm1 = vcmask 261120   ;;  %v28_v1 = vld [vmem:[#allocation2 + $0x8] sm:$0xff] }
   0xf   :  { %132 = vmatprep.subr.mxu0 %v192_v0  ;;  %136 = vmatprep.mubr.msk.f32.mxu0 %vm193_vm0, %v192_v0  ;;  %v27_v2 = vld [vmem:[#allocation2] sm:$0xff]  ;;  %s194_s18 = smov [#allocation5]   ;;  %vm109_vm2 = vcmask 122880  }
  0x10   :  { %133 = vmatpush3.xpose.msk.msra.mxu0 %vm29_vm1, %v28_v1  ;;  %v26_v3 = vld [vmem:[%s220_s1] sm:$0x1]  ;;  %s117_s19 = sshll.u32 %s194_s18, 4  ;;  %s118_s19 = int_to_ptr.vmem [resolvable:$true] %s117_s19 }
  0x11   :  { %134 = vmatprep.subr.mxu0 %v192_v0  ;;  %s165_s0 = scalar_lea.vmem %s118_s19, 16  ;;  %s169_s20 = scalar_lea.vmem %s118_s19, 32 }
  0x12   :  { %p166_p5 = scmp.ne.s32.totalorder %s118_s19, %s165_s0  ;;  %p170_p6 = scmp.lt.s32.totalorder %s118_s19, %s118_s19 }
  0x13   :  { %p171_p7 = scmp.lt.s32.totalorder %s169_s20, %s165_s0 }
  0x14   :  { %135 = vmatpush3.xpose.msk.msra.mxu0 %vm29_vm1, %v27_v2 }
  0x15   :  { %p172_p8 = por %p171_p7, %p170_p6 }
  0x17   :  { %137 = vmatmul.mubr.msk.f32.vlgmr.msra.gmra.mxu0 %vm29_vm1, %v26_v3  ;;  %p173_p9 = pnand %p172_p8, %p166_p5 }
  0xd7   :  { %v105_v4 = vpop.f32.mrf.mxu0 }
  0xd8   :  { %110 = vst.msk [vmem:[#allocation5] sm:$0x1] %vm109_vm2, %v105_v4 }
  0xd9   :  { %v138_v5 = vpop.f32.mrf.mxu0 }
  0xda   :  { %176 = shalt.err (!%p173_p9)
}
  0xdb   :  { %120 = dma.vmem_to_hbm [thread:$0]  %s118_s19, 16, %s221_s2, [#allocation4]  }
  0xdc   :  { %187 = dma.done.wait [#allocation4], 16  }
  0xdd   :  { %188 = vsyncadd [#allocation4], 4294967280 }
  0xde   :  { %124 = vsyncpa [#allocation3], 1 }
  0xdf   :  { %125 = vsyncpa [#allocation4], 1 }

</bundles_post_ra>
